<compile_context>
chip_gen: v5e
topology: v5e:2x2
jax: 0.10.0
libtpu: 0.0.40
codegen_flags: <defaults>
</compile_context>

<pallas_src>
import jax
import jax.numpy as jnp
from jax import lax
from jax.experimental import pallas as pl
from jax.experimental.pallas import tpu as pltpu

_NEG_INF = float("-inf")


# ----------------------------------------------------------------------------
# Fused Pallas kernel: CLIP contrastive loss + embedding MSE
# ----------------------------------------------------------------------------
def _fused_clip_mse_kernel(img_ref, txt_ref, scale_ref,
                           clip_ref, mse_ref,
                           col_max_ref, col_sum_ref,
                           row_lse_ref, diag_ref, mse_acc_ref):
    """One row-block step of the fused CLIP + MSE loss.

    img_ref   : VMEM [tq, D]  current row block of image embeddings
    txt_ref   : VMEM [B,  D]  full text embeddings (resident across steps)
    scale_ref : SMEM [1]      logit scale (temperature)
    clip_ref  : VMEM [1, 1]   CLIP loss output (written at last step)
    mse_ref   : VMEM [1, 1]   MSE  loss output (written at last step)
    scratch   : running column max / sum-exp, row-LSE sum, diag sum, MSE sum
    """
    i = pl.program_id(0)
    nb = pl.num_programs(0)
    tq = img_ref.shape[0]
    b_full, d = txt_ref.shape

    @pl.when(i == 0)
    def _init():
        col_max_ref[...] = jnp.full_like(col_max_ref, _NEG_INF)
        col_sum_ref[...] = jnp.zeros_like(col_sum_ref)
        row_lse_ref[...] = jnp.zeros_like(row_lse_ref)
        diag_ref[...] = jnp.zeros_like(diag_ref)
        mse_acc_ref[...] = jnp.zeros_like(mse_acc_ref)

    scale = scale_ref[0]
    img_blk = img_ref[...]                                   # [tq, D] native dtype
    txt_all = txt_ref[...]                                   # [B,  D] native dtype

    # Fold the temperature into the small [tq, D] operand (keep MXU dtype).
    img_scaled = (img_blk * scale).astype(img_blk.dtype)

    # logits[r, c] = scale * <img_r, txt_c>; contract last dims directly
    # (no transpose of txt), f32 accumulation on the MXU.
    logits = lax.dot_general(
        img_scaled, txt_all,
        dimension_numbers=(((1,), (1,)), ((), ())),
        preferred_element_type=jnp.float32,
    )                                                        # [tq, B] f32

    # ---- image -> text direction: per-row log-sum-exp -----------------------
    row_max = jnp.max(logits, axis=-1, keepdims=True)                   # [tq, 1]
    row_lse = row_max + jnp.log(
        jnp.sum(jnp.exp(logits - row_max), axis=-1, keepdims=True))     # [tq, 1]
    row_lse_ref[...] += jnp.sum(row_lse, axis=0, keepdims=True)         # [1, 1]

    # ---- text -> image direction: online per-column log-sum-exp -------------
    blk_col_max = jnp.max(logits, axis=0, keepdims=True)                # [1, B]
    new_col_max = jnp.maximum(col_max_ref[...], blk_col_max)
    col_sum_ref[...] = (col_sum_ref[...] * jnp.exp(col_max_ref[...] - new_col_max)
                        + jnp.sum(jnp.exp(logits - new_col_max), axis=0,
                                  keepdims=True))
    col_max_ref[...] = new_col_max

    # ---- shared diagonal term (labels = arange(B)), O(B*D) ------------------
    row_start = pl.multiple_of(i * tq, tq)
    txt_blk = txt_ref[pl.ds(row_start, tq), :]               # matching text rows
    img_f32 = img_blk.astype(jnp.float32)
    txt_f32 = txt_blk.astype(jnp.float32)
    diag = scale * jnp.sum(img_f32 * txt_f32, axis=-1, keepdims=True)   # [tq, 1]
    diag_ref[...] += jnp.sum(diag, axis=0, keepdims=True)               # [1, 1]

    # ---- MSE (free filler under the matmul) ----------------------------------
    delta = img_f32 - txt_f32
    sq_rows = jnp.sum(delta * delta, axis=-1, keepdims=True)            # [tq, 1]
    mse_acc_ref[...] += jnp.sum(sq_rows, axis=0, keepdims=True)         # [1, 1]

    @pl.when(i == nb - 1)
    def _finalize():
        inv_b = 1.0 / b_full
        col_lse = col_max_ref[...] + jnp.log(col_sum_ref[...])          # [1, B]
        col_lse_sum = jnp.sum(col_lse, axis=-1, keepdims=True)          # [1, 1]
        loss_i2t = (row_lse_ref[...] - diag_ref[...]) * inv_b
        loss_t2i = (col_lse_sum - diag_ref[...]) * inv_b
        clip_ref[...] = 0.5 * (loss_i2t + loss_t2i)
        mse_ref[...] = mse_acc_ref[...] * (1.0 / (b_full * d))


def _pick_row_block(batch, max_rows):
    """Largest row block that divides `batch`, is <= max_rows and 8-aligned."""
    if batch <= max_rows:
        return batch
    t = (max_rows // 8) * 8
    while t >= 8:
        if batch % t == 0:
            return t
        t -= 8
    return batch  # fallback: single block


def fused_clip_mse_losses(image_embeddings, text_embeddings, logit_scale,
                          *, max_row_block=256):
    """Returns (clip_contrastive_loss, mse_loss) from one fused pallas_call."""
    b, d = image_embeddings.shape
    assert text_embeddings.shape == (b, d)
    scale = jnp.asarray(logit_scale, jnp.float32).reshape(1)

    tq = _pick_row_block(b, max_row_block)
    nb = b // tq

    itemsize_i = jnp.dtype(image_embeddings.dtype).itemsize
    itemsize_t = jnp.dtype(text_embeddings.dtype).itemsize
    cost = pl.CostEstimate(
        flops=2 * b * b * d + 8 * b * d,
        transcendentals=2 * b * b,
        bytes_accessed=int(b * d * (itemsize_i + itemsize_t) + 12),
    )

    clip_out, mse_out = pl.pallas_call(
        _fused_clip_mse_kernel,
        out_shape=(jax.ShapeDtypeStruct((1, 1), jnp.float32),
                   jax.ShapeDtypeStruct((1, 1), jnp.float32)),
        grid=(nb,),
        in_specs=[
            pl.BlockSpec((tq, d), lambda i: (i, 0)),             # img row block
            pl.BlockSpec((b, d), lambda i: (0, 0)),              # txt, resident
            pl.BlockSpec(memory_space=pltpu.MemorySpace.SMEM),   # logit scale
        ],
        out_specs=(pl.BlockSpec((1, 1), lambda i: (0, 0)),
                   pl.BlockSpec((1, 1), lambda i: (0, 0))),
        scratch_shapes=[
            pltpu.VMEM((1, b), jnp.float32),   # running column max
            pltpu.VMEM((1, b), jnp.float32),   # running column sum-exp
            pltpu.VMEM((1, 1), jnp.float32),   # sum of per-row LSE
            pltpu.VMEM((1, 1), jnp.float32),   # sum of diagonal logits
            pltpu.VMEM((1, 1), jnp.float32),   # sum of squared differences
        ],
        compiler_params=pltpu.CompilerParams(
            dimension_semantics=("arbitrary",)),
        cost_estimate=cost,
    )(image_embeddings, text_embeddings, scale)
    return clip_out[0, 0], mse_out[0, 0]


# ----------------------------------------------------------------------------
# Loss modules (Pallas-backed) + CombinedLoss container
# ----------------------------------------------------------------------------
class ClipContrastiveLoss:
    name = "contrastive"

    def __init__(self, loss_ratio=1.0):
        self.loss_ratio = loss_ratio

    def __call__(self, *, image_embeddings, text_embeddings, logit_scale, **kwargs):
        clip_v, _ = fused_clip_mse_losses(image_embeddings, text_embeddings,
                                          logit_scale)
        return clip_v


class EmbeddingMSELoss:
    name = "mse"

    def __init__(self, loss_ratio=1.0):
        self.loss_ratio = loss_ratio

    def __call__(self, *, image_embeddings, text_embeddings, logit_scale=None,
                 **kwargs):
        scale = 1.0 if logit_scale is None else logit_scale
        _, mse_v = fused_clip_mse_losses(image_embeddings, text_embeddings, scale)
        return mse_v


class CombinedLoss:
    """Faithful port of the PyTorch CombinedLoss forward pass.

    When the loss list consists of the Pallas-backed CLIP / MSE losses, both
    are computed by ONE fused kernel launch (shared HBM reads); otherwise it
    falls back to calling each loss module individually, like the original.
    """

    def __init__(self, loss_list):
        self.loss_list = loss_list

    def forward(self, **kwargs):
        loss_dict = dict()
        total_loss = 0.0

        fused = None
        if self.loss_list and all(
            isinstance(l, (ClipContrastiveLoss, EmbeddingMSELoss))
            for l in self.loss_list
        ):
            clip_v, mse_v = fused_clip_mse_losses(
                kwargs["image_embeddings"],
                kwargs["text_embeddings"],
                kwargs.get("logit_scale", 1.0),
            )
            fused = {ClipContrastiveLoss.name: clip_v, EmbeddingMSELoss.name: mse_v}

        for loss in self.loss_list:
            cur_loss = fused[loss.name] if fused is not None else loss(**kwargs)
            loss_dict[loss.name] = cur_loss
            total_loss = total_loss + cur_loss * loss.loss_ratio
        loss_dict["total"] = total_loss
        return loss_dict

    __call__ = forward


# ----------------------------------------------------------------------------
if __name__ == "__main__":
    def make_inputs(key, b, d):
        k_img, k_txt = jax.random.split(key)
        img = jax.random.normal(k_img, (b, d), dtype=jnp.float32)
        txt = jax.random.normal(k_txt, (b, d), dtype=jnp.float32)
        img = img / jnp.linalg.norm(img, axis=-1, keepdims=True)
        txt = txt / jnp.linalg.norm(txt, axis=-1, keepdims=True)
        return img, txt

    def reference(img, txt, scale, clip_ratio, mse_ratio):
        b = img.shape[0]
        logits = scale * (img @ txt.T)
        lab = jnp.arange(b)
        ce_i = -jax.nn.log_softmax(logits, axis=-1)[lab, lab].mean()
        ce_t = -jax.nn.log_softmax(logits.T, axis=-1)[lab, lab].mean()
        clip = 0.5 * (ce_i + ce_t)
        mse = jnp.mean((img - txt) ** 2)
        return clip, mse, clip * clip_ratio + mse * mse_ratio

    # --- small shapes: batch=8, embedding dim=32 (single row block) ---------
    B, D = 8, 32
    img, txt = make_inputs(jax.random.PRNGKey(0), B, D)
    logit_scale = jnp.array([1.0 / 0.07], dtype=jnp.float32)

    combined = CombinedLoss(
        [ClipContrastiveLoss(loss_ratio=1.0), EmbeddingMSELoss(loss_ratio=0.5)]
    )
    loss_dict = combined(
        image_embeddings=img, text_embeddings=txt, logit_scale=logit_scale
    )
    jax.block_until_ready(loss_dict["total"])

    ref_clip, ref_mse, ref_total = reference(img, txt, logit_scale[0], 1.0, 0.5)
    assert jnp.allclose(loss_dict["contrastive"], ref_clip, rtol=1e-5, atol=2e-5)
    assert jnp.allclose(loss_dict["mse"], ref_mse, rtol=1e-5, atol=2e-5)
    assert jnp.allclose(loss_dict["total"], ref_total, rtol=1e-5, atol=2e-5)

    # --- exercise the gridded path (4 row blocks, online column LSE) --------
    B2, D2 = 32, 32
    img2, txt2 = make_inputs(jax.random.PRNGKey(1), B2, D2)
    clip2, mse2 = fused_clip_mse_losses(img2, txt2, logit_scale, max_row_block=8)
    jax.block_until_ready(clip2)
    ref_clip2, ref_mse2, _ = reference(img2, txt2, logit_scale[0], 1.0, 0.5)
    assert jnp.allclose(clip2, ref_clip2, rtol=1e-5, atol=2e-5)
    assert jnp.allclose(mse2, ref_mse2, rtol=1e-5, atol=2e-5)

    print("KERNEL_OK")
</pallas_src>

<mosaic_0001>
module attributes {stable_mosaic.version = 11 : i64} {
  func.func @_fused_clip_mse_kernel(%arg0: i32, %arg1: memref<8x32xf32, #tpu.memory_space<vmem>>, %arg2: memref<8x32xf32, #tpu.memory_space<vmem>>, %arg3: memref<1xf32, #tpu.memory_space<smem>>, %arg4: memref<1x1xf32, #tpu.memory_space<vmem>>, %arg5: memref<1x1xf32, #tpu.memory_space<vmem>>, %arg6: memref<1x8xf32, #tpu.memory_space<vmem>>, %arg7: memref<1x8xf32, #tpu.memory_space<vmem>>, %arg8: memref<1x1xf32, #tpu.memory_space<vmem>>, %arg9: memref<1x1xf32, #tpu.memory_space<vmem>>, %arg10: memref<1x1xf32, #tpu.memory_space<vmem>>) attributes {dimension_semantics = [#tpu.dimension_semantics<arbitrary>], iteration_bounds = array<i64: 1>, scalar_prefetch = 0 : i64, scratch_operands = 5 : i64, tpu.core_type = #tpu.core_type<tc>, window_params = [{transform_indices = @transform_0, window_bounds = array<i64: 8, 32>}, {pipeline_mode = #tpu.pipeline_mode<synchronous>, transform_indices = @transform_1, window_bounds = array<i64: 8, 32>}, {transform_indices = @transform_2, window_bounds = array<i64: 1>}, {pipeline_mode = #tpu.pipeline_mode<synchronous>, transform_indices = @transform_3, window_bounds = array<i64: 1, 1>}, {pipeline_mode = #tpu.pipeline_mode<synchronous>, transform_indices = @transform_4, window_bounds = array<i64: 1, 1>}]} {
    %c0_i32 = arith.constant 0 : i32
    %0 = arith.cmpi eq, %arg0, %c0_i32 : i32
    %1 = arith.extui %0 : i1 to i32
    %c0_i32_0 = arith.constant 0 : i32
    %2 = arith.cmpi ne, %1, %c0_i32_0 : i32
    scf.if %2 {
      %cst_39 = arith.constant 0xFF800000 : f32
      %66 = vector.broadcast %cst_39 : f32 to vector<1x8xf32>
      %c0_40 = arith.constant 0 : index
      %c0_41 = arith.constant 0 : index
      %67 = vector.load %arg6[%c0_40, %c0_41] : memref<1x8xf32, #tpu.memory_space<vmem>>, vector<1x8xf32>
      tpu.vector_store %arg6[%c0_40, %c0_41], %66 {strides = array<i32>} : memref<1x8xf32, #tpu.memory_space<vmem>>, vector<1x8xf32>,
      %cst_42 = arith.constant 0.000000e+00 : f32
      %68 = vector.broadcast %cst_42 : f32 to vector<1x8xf32>
      %c0_43 = arith.constant 0 : index
      %c0_44 = arith.constant 0 : index
      %69 = vector.load %arg7[%c0_43, %c0_44] : memref<1x8xf32, #tpu.memory_space<vmem>>, vector<1x8xf32>
      tpu.vector_store %arg7[%c0_43, %c0_44], %68 {strides = array<i32>} : memref<1x8xf32, #tpu.memory_space<vmem>>, vector<1x8xf32>,
      %cst_45 = arith.constant 0.000000e+00 : f32
      %70 = vector.broadcast %cst_45 : f32 to vector<1x1xf32>
      %c0_46 = arith.constant 0 : index
      %c0_47 = arith.constant 0 : index
      %71 = vector.load %arg8[%c0_46, %c0_47] : memref<1x1xf32, #tpu.memory_space<vmem>>, vector<1x1xf32>
      tpu.vector_store %arg8[%c0_46, %c0_47], %70 {strides = array<i32>} : memref<1x1xf32, #tpu.memory_space<vmem>>, vector<1x1xf32>,
      %cst_48 = arith.constant 0.000000e+00 : f32
      %72 = vector.broadcast %cst_48 : f32 to vector<1x1xf32>
      %c0_49 = arith.constant 0 : index
      %c0_50 = arith.constant 0 : index
      %73 = vector.load %arg9[%c0_49, %c0_50] : memref<1x1xf32, #tpu.memory_space<vmem>>, vector<1x1xf32>
      tpu.vector_store %arg9[%c0_49, %c0_50], %72 {strides = array<i32>} : memref<1x1xf32, #tpu.memory_space<vmem>>, vector<1x1xf32>,
      %cst_51 = arith.constant 0.000000e+00 : f32
      %74 = vector.broadcast %cst_51 : f32 to vector<1x1xf32>
      %c0_52 = arith.constant 0 : index
      %c0_53 = arith.constant 0 : index
      %75 = vector.load %arg10[%c0_52, %c0_53] : memref<1x1xf32, #tpu.memory_space<vmem>>, vector<1x1xf32>
      tpu.vector_store %arg10[%c0_52, %c0_53], %74 {strides = array<i32>} : memref<1x1xf32, #tpu.memory_space<vmem>>, vector<1x1xf32>,
    } else {
    }
    %c0 = arith.constant 0 : index
    %3 = memref.load %arg3[%c0] : memref<1xf32, #tpu.memory_space<smem>>
    %c0_1 = arith.constant 0 : index
    %c0_2 = arith.constant 0 : index
    %4 = vector.load %arg1[%c0_1, %c0_2] : memref<8x32xf32, #tpu.memory_space<vmem>>, vector<8x32xf32>
    %c0_3 = arith.constant 0 : index
    %c0_4 = arith.constant 0 : index
    %5 = vector.load %arg2[%c0_3, %c0_4] : memref<8x32xf32, #tpu.memory_space<vmem>>, vector<8x32xf32>
    %6 = vector.broadcast %3 : f32 to vector<8x32xf32>
    %7 = arith.mulf %4, %6 : vector<8x32xf32>
    %cst = arith.constant dense<0.000000e+00> : vector<8x8xf32>
    %8 = tpu.matmul %7, %5, %cst {dimension_numbers = #tpu.dot_dimension_numbers<[1], [1], [0], [0], [0, 0, 1, 0], [], []>} : vector<8x32xf32>, vector<8x32xf32>, vector<8x8xf32> -> vector<8x8xf32>
    %cst_5 = arith.constant dense<0xFF800000> : vector<8xf32>
    %9 = vector.multi_reduction <maximumf>, %8, %cst_5 [1] : vector<8x8xf32> to vector<8xf32>
    %10 = vector.shape_cast %9 : vector<8xf32> to vector<8x1xf32>
    %11 = vector.broadcast %10 : vector<8x1xf32> to vector<8x8xf32>
    %12 = arith.subf %8, %11 : vector<8x8xf32>
    %13 = math.exp %12 : vector<8x8xf32>
    %cst_6 = arith.constant dense<0.000000e+00> : vector<8xf32>
    %14 = vector.multi_reduction <add>, %13, %cst_6 [1] : vector<8x8xf32> to vector<8xf32>
    %15 = vector.shape_cast %14 : vector<8xf32> to vector<8x1xf32>
    %16 = math.log %15 : vector<8x1xf32>
    %17 = arith.addf %10, %16 : vector<8x1xf32>
    %c0_7 = arith.constant 0 : index
    %c0_8 = arith.constant 0 : index
    %18 = vector.load %arg8[%c0_7, %c0_8] : memref<1x1xf32, #tpu.memory_space<vmem>>, vector<1x1xf32>
    %cst_9 = arith.constant dense<0.000000e+00> : vector<1xf32>
    %19 = vector.multi_reduction <add>, %17, %cst_9 [0] : vector<8x1xf32> to vector<1xf32>
    %20 = vector.shape_cast %19 : vector<1xf32> to vector<1x1xf32>
    %21 = arith.addf %18, %20 : vector<1x1xf32>
    %c0_10 = arith.constant 0 : index
    %c0_11 = arith.constant 0 : index
    %22 = vector.load %arg8[%c0_10, %c0_11] : memref<1x1xf32, #tpu.memory_space<vmem>>, vector<1x1xf32>
    tpu.vector_store %arg8[%c0_10, %c0_11], %21 {strides = array<i32>} : memref<1x1xf32, #tpu.memory_space<vmem>>, vector<1x1xf32>,
    %cst_12 = arith.constant dense<0xFF800000> : vector<8xf32>
    %23 = vector.multi_reduction <maximumf>, %8, %cst_12 [0] : vector<8x8xf32> to vector<8xf32>
    %24 = vector.shape_cast %23 : vector<8xf32> to vector<1x8xf32>
    %c0_13 = arith.constant 0 : index
    %c0_14 = arith.constant 0 : index
    %25 = vector.load %arg6[%c0_13, %c0_14] : memref<1x8xf32, #tpu.memory_space<vmem>>, vector<1x8xf32>
    %26 = arith.maximumf %25, %24 : vector<1x8xf32>
    %c0_15 = arith.constant 0 : index
    %c0_16 = arith.constant 0 : index
    %27 = vector.load %arg7[%c0_15, %c0_16] : memref<1x8xf32, #tpu.memory_space<vmem>>, vector<1x8xf32>
    %c0_17 = arith.constant 0 : index
    %c0_18 = arith.constant 0 : index
    %28 = vector.load %arg6[%c0_17, %c0_18] : memref<1x8xf32, #tpu.memory_space<vmem>>, vector<1x8xf32>
    %29 = arith.subf %28, %26 : vector<1x8xf32>
    %30 = math.exp %29 : vector<1x8xf32>
    %31 = arith.mulf %27, %30 : vector<1x8xf32>
    %32 = vector.broadcast %26 : vector<1x8xf32> to vector<8x8xf32>
    %33 = arith.subf %8, %32 : vector<8x8xf32>
    %34 = math.exp %33 : vector<8x8xf32>
    %cst_19 = arith.constant dense<0.000000e+00> : vector<8xf32>
    %35 = vector.multi_reduction <add>, %34, %cst_19 [0] : vector<8x8xf32> to vector<8xf32>
    %36 = vector.shape_cast %35 : vector<8xf32> to vector<1x8xf32>
    %37 = arith.addf %31, %36 : vector<1x8xf32>
    %c0_20 = arith.constant 0 : index
    %c0_21 = arith.constant 0 : index
    %38 = vector.load %arg7[%c0_20, %c0_21] : memref<1x8xf32, #tpu.memory_space<vmem>>, vector<1x8xf32>
    tpu.vector_store %arg7[%c0_20, %c0_21], %37 {strides = array<i32>} : memref<1x8xf32, #tpu.memory_space<vmem>>, vector<1x8xf32>,
    %c0_22 = arith.constant 0 : index
    %c0_23 = arith.constant 0 : index
    %39 = vector.load %arg6[%c0_22, %c0_23] : memref<1x8xf32, #tpu.memory_space<vmem>>, vector<1x8xf32>
    tpu.vector_store %arg6[%c0_22, %c0_23], %26 {strides = array<i32>} : memref<1x8xf32, #tpu.memory_space<vmem>>, vector<1x8xf32>,
    %c8_i32 = arith.constant 8 : i32
    %40 = arith.muli %arg0, %c8_i32 : i32
    %41 = tpu.assume_multiple %40, 8 : i32
    %42 = arith.index_cast %41 : i32 to index
    %c0_24 = arith.constant 0 : index
    %43 = vector.load %arg2[%42, %c0_24] : memref<8x32xf32, #tpu.memory_space<vmem>>, vector<8x32xf32>
    %44 = arith.mulf %4, %43 : vector<8x32xf32>
    %cst_25 = arith.constant dense<0.000000e+00> : vector<8xf32>
    %45 = vector.multi_reduction <add>, %44, %cst_25 [1] : vector<8x32xf32> to vector<8xf32>
    %46 = vector.shape_cast %45 : vector<8xf32> to vector<8x1xf32>
    %47 = vector.broadcast %3 : f32 to vector<8x1xf32>
    %48 = arith.mulf %47, %46 : vector<8x1xf32>
    %c0_26 = arith.constant 0 : index
    %c0_27 = arith.constant 0 : index
    %49 = vector.load %arg9[%c0_26, %c0_27] : memref<1x1xf32, #tpu.memory_space<vmem>>, vector<1x1xf32>
    %cst_28 = arith.constant dense<0.000000e+00> : vector<1xf32>
    %50 = vector.multi_reduction <add>, %48, %cst_28 [0] : vector<8x1xf32> to vector<1xf32>
    %51 = vector.shape_cast %50 : vector<1xf32> to vector<1x1xf32>
    %52 = arith.addf %49, %51 : vector<1x1xf32>
    %c0_29 = arith.constant 0 : index
    %c0_30 = arith.constant 0 : index
    %53 = vector.load %arg9[%c0_29, %c0_30] : memref<1x1xf32, #tpu.memory_space<vmem>>, vector<1x1xf32>
    tpu.vector_store %arg9[%c0_29, %c0_30], %52 {strides = array<i32>} : memref<1x1xf32, #tpu.memory_space<vmem>>, vector<1x1xf32>,
    %54 = arith.subf %4, %43 : vector<8x32xf32>
    %55 = arith.mulf %54, %54 : vector<8x32xf32>
    %cst_31 = arith.constant dense<0.000000e+00> : vector<8xf32>
    %56 = vector.multi_reduction <add>, %55, %cst_31 [1] : vector<8x32xf32> to vector<8xf32>
    %57 = vector.shape_cast %56 : vector<8xf32> to vector<8x1xf32>
    %c0_32 = arith.constant 0 : index
    %c0_33 = arith.constant 0 : index
    %58 = vector.load %arg10[%c0_32, %c0_33] : memref<1x1xf32, #tpu.memory_space<vmem>>, vector<1x1xf32>
    %cst_34 = arith.constant dense<0.000000e+00> : vector<1xf32>
    %59 = vector.multi_reduction <add>, %57, %cst_34 [0] : vector<8x1xf32> to vector<1xf32>
    %60 = vector.shape_cast %59 : vector<1xf32> to vector<1x1xf32>
    %61 = arith.addf %58, %60 : vector<1x1xf32>
    %c0_35 = arith.constant 0 : index
    %c0_36 = arith.constant 0 : index
    %62 = vector.load %arg10[%c0_35, %c0_36] : memref<1x1xf32, #tpu.memory_space<vmem>>, vector<1x1xf32>
    tpu.vector_store %arg10[%c0_35, %c0_36], %61 {strides = array<i32>} : memref<1x1xf32, #tpu.memory_space<vmem>>, vector<1x1xf32>,
    %c0_i32_37 = arith.constant 0 : i32
    %63 = arith.cmpi eq, %arg0, %c0_i32_37 : i32
    %64 = arith.extui %63 : i1 to i32
    %c0_i32_38 = arith.constant 0 : i32
    %65 = arith.cmpi ne, %64, %c0_i32_38 : i32
    scf.if %65 {
      %c0_39 = arith.constant 0 : index
      %c0_40 = arith.constant 0 : index
      %66 = vector.load %arg6[%c0_39, %c0_40] : memref<1x8xf32, #tpu.memory_space<vmem>>, vector<1x8xf32>
      %c0_41 = arith.constant 0 : index
      %c0_42 = arith.constant 0 : index
      %67 = vector.load %arg7[%c0_41, %c0_42] : memref<1x8xf32, #tpu.memory_space<vmem>>, vector<1x8xf32>
      %68 = math.log %67 : vector<1x8xf32>
      %69 = arith.addf %66, %68 : vector<1x8xf32>
      %cst_43 = arith.constant dense<0.000000e+00> : vector<1xf32>
      %70 = vector.multi_reduction <add>, %69, %cst_43 [1] : vector<1x8xf32> to vector<1xf32>
      %71 = vector.shape_cast %70 : vector<1xf32> to vector<1x1xf32>
      %c0_44 = arith.constant 0 : index
      %c0_45 = arith.constant 0 : index
      %72 = vector.load %arg8[%c0_44, %c0_45] : memref<1x1xf32, #tpu.memory_space<vmem>>, vector<1x1xf32>
      %c0_46 = arith.constant 0 : index
      %c0_47 = arith.constant 0 : index
      %73 = vector.load %arg9[%c0_46, %c0_47] : memref<1x1xf32, #tpu.memory_space<vmem>>, vector<1x1xf32>
      %74 = arith.subf %72, %73 : vector<1x1xf32>
      %cst_48 = arith.constant 1.250000e-01 : f32
      %75 = vector.broadcast %cst_48 : f32 to vector<1x1xf32>
      %76 = arith.mulf %74, %75 : vector<1x1xf32>
      %c0_49 = arith.constant 0 : index
      %c0_50 = arith.constant 0 : index
      %77 = vector.load %arg9[%c0_49, %c0_50] : memref<1x1xf32, #tpu.memory_space<vmem>>, vector<1x1xf32>
      %78 = arith.subf %71, %77 : vector<1x1xf32>
      %cst_51 = arith.constant 1.250000e-01 : f32
      %79 = vector.broadcast %cst_51 : f32 to vector<1x1xf32>
      %80 = arith.mulf %78, %79 : vector<1x1xf32>
      %81 = arith.addf %76, %80 : vector<1x1xf32>
      %cst_52 = arith.constant 5.000000e-01 : f32
      %82 = vector.broadcast %cst_52 : f32 to vector<1x1xf32>
      %83 = arith.mulf %82, %81 : vector<1x1xf32>
      %c0_53 = arith.constant 0 : index
      %c0_54 = arith.constant 0 : index
      %84 = vector.load %arg4[%c0_53, %c0_54] : memref<1x1xf32, #tpu.memory_space<vmem>>, vector<1x1xf32>
      tpu.vector_store %arg4[%c0_53, %c0_54], %83 {strides = array<i32>} : memref<1x1xf32, #tpu.memory_space<vmem>>, vector<1x1xf32>,
      %c0_55 = arith.constant 0 : index
      %c0_56 = arith.constant 0 : index
      %85 = vector.load %arg10[%c0_55, %c0_56] : memref<1x1xf32, #tpu.memory_space<vmem>>, vector<1x1xf32>
      %cst_57 = arith.constant 3.906250e-03 : f32
      %86 = vector.broadcast %cst_57 : f32 to vector<1x1xf32>
      %87 = arith.mulf %85, %86 : vector<1x1xf32>
      %c0_58 = arith.constant 0 : index
      %c0_59 = arith.constant 0 : index
      %88 = vector.load %arg5[%c0_58, %c0_59] : memref<1x1xf32, #tpu.memory_space<vmem>>, vector<1x1xf32>
      tpu.vector_store %arg5[%c0_58, %c0_59], %87 {strides = array<i32>} : memref<1x1xf32, #tpu.memory_space<vmem>>, vector<1x1xf32>,
    } else {
    }
    return
  }
  func.func @transform_0(%arg0: i32) -> (i32, i32) {
    %c0_i32 = arith.constant 0 : i32
    %c0_i32_0 = arith.constant 0 : i32
    return %arg0, %c0_i32 : i32, i32
  }
  func.func @transform_1(%arg0: i32) -> (i32, i32) {
    %c0_i32 = arith.constant 0 : i32
    %c0_i32_0 = arith.constant 0 : i32
    %c0_i32_1 = arith.constant 0 : i32
    return %c0_i32, %c0_i32_0 : i32, i32
  }
  func.func @transform_2(%arg0: i32) -> i32 {
    %c0_i32 = arith.constant 0 : i32
    %c0_i32_0 = arith.constant 0 : i32
    return %c0_i32 : i32
  }
  func.func @transform_3(%arg0: i32) -> (i32, i32) {
    %c0_i32 = arith.constant 0 : i32
    %c0_i32_0 = arith.constant 0 : i32
    %c0_i32_1 = arith.constant 0 : i32
    return %c0_i32, %c0_i32_0 : i32, i32
  }
  func.func @transform_4(%arg0: i32) -> (i32, i32) {
    %c0_i32 = arith.constant 0 : i32
    %c0_i32_0 = arith.constant 0 : i32
    %c0_i32_1 = arith.constant 0 : i32
    return %c0_i32, %c0_i32_0 : i32, i32
  }
}

</mosaic_0001>

<bundles_post_ra>
// kernel: tpu_custom_call.1
= control target key start
LH: loop header
LB: loop body
LE: loop exit
PB: predicated region body
PF: predicated region fallthrough
CT: control target
= control target key end

     0   :  { %11 = vsyncpa [#allocation9], 0  ;;  %s427_s0 = inlined_call_operand.hbm [shape: f32[8,32], index: 0, kind: input, shape index: {}]   ;;  %s428_s1 = inlined_call_operand.hbm [shape: f32[8,32], index: 1, kind: input, shape index: {}]   ;;  %s429_s2 = inlined_call_operand.<no memory space> [shape: f32[1], index: 2, kind: input, shape index: {}]   ;;  %s430_s3 = inlined_call_operand.hbm [shape: f32[1,1], index: 3, kind: output, shape index: {0}]   ;;  %s431_s4 = inlined_call_operand.hbm [shape: f32[1,1], index: 4, kind: output, shape index: {1}]  }
   0x1   :  { %12 = vsyncpa [#allocation12], 0 }
   0x2   :  { %13 = vsyncpa [#allocation10], 0 }
   0x3   :  { %14 = vsyncpa [#allocation15], 0  ;;  %s20_s17 = sshll.u32 %s427_s0, 4  ;;  %s353_s18 = smov [#allocation8]   ;;  %s21_s17 = int_to_ptr.hbm [resolvable:$true] %s20_s17 }
   0x4   :  { %s22_s19 = sshll.u32 %s353_s18, 4  ;;  %s31_s22 = sshll.u32 %s428_s1, 4  ;;  %s23_s19 = int_to_ptr.vmem [resolvable:$true] %s22_s19  ;;  %s32_s22 = int_to_ptr.hbm [resolvable:$true] %s31_s22 }
   0x5   :  { %25 = dma.hbm_to_vmem [thread:$0]  %s21_s17, 128, %s23_s19, [#allocation9]  }
   0x6   :  { %s354_s23 = smov [#allocation11]  }
   0x7   :  { %s33_s24 = sshll.u32 %s354_s23, 4  ;;  %s34_s24 = int_to_ptr.vmem [resolvable:$true] %s33_s24 }
   0x8   :  { %36 = dma.hbm_to_vmem [thread:$0]  %s32_s22, 128, %s34_s24, [#allocation12]  }
   0x9   :  { %345 = dma.done.wait [#allocation9], 128  }
   0xa   :  { %346 = vsyncadd [#allocation9], 4294967168 }
   0xb   :  { %347 = dma.done.wait [#allocation12], 128  }
   0xc   :  { %348 = vsyncadd [#allocation12], 4294967168  ;;  %vm51_vm0 = vcmask 57344   ;;  %v355_v0 = vmov -inf   ;;  %v356_v1 = vmov 0.0   ;;  %vm63_vm1 = vcmask 261120  }
   0xd   :  { %52 = vst.msk [vmem:[#allocation2] sm:$0x1] %vm51_vm0, %v355_v0  ;;  %v61_v2 = vstv %s429_s2  ;;  %v60_v3 = vld [vmem:[#allocation11] sm:$0xff]  ;;  %v59_v4 = vld [vmem:[#allocation8] sm:$0xff]  ;;  %vm90_vm2 = vcmask 64512   ;;  %vm54_vm3 = vcmask 0  }
   0xe   :  { %53 = vst.msk [vmem:[#allocation3] sm:$0x1] %vm51_vm0, %v356_v1  ;;  %231 = vmatpush.xpose.msk.msra.mxu0 %vm63_vm1, %v60_v3  ;;  %v62_v5 = vmul.f32 %v61_v2, %v59_v4  ;;  %v146_v10 = vmul.f32 %v60_v3, %v59_v4  ;;  %v160_v41 = vsub.f32 %v59_v4, %v60_v3  ;;  %s357_s2 = smov [#allocation14]   ;;  %s215_s6 = sshll.u32 %s431_s4, 4  ;;  %s216_s6 = int_to_ptr.hbm [resolvable:$true] %s215_s6 }
   0xf   :  { %56 = vst.msk [vmem:[#allocation5] sm:$0x1] %vm54_vm3, %v356_v1  ;;  %s213_s29 = sshll.u32 %s357_s2, 4  ;;  %s358_s4 = smov [#allocation13]   ;;  %s214_s29 = int_to_ptr.vmem [resolvable:$true] %s213_s29 }
  0x10   :  { %v147_v12 = vsel %vm63_vm1, %v146_v10, 0.0  ;;  %v161_v42 = vmul.f32 %v160_v41, %v160_v41  ;;  %55 = vst.msk [vmem:[#allocation4] sm:$0x1] %vm54_vm3, %v356_v1  ;;  %s202_s7 = sshll.u32 %s358_s4, 4  ;;  %s204_s10 = sshll.u32 %s430_s3, 4  ;;  %s203_s7 = int_to_ptr.vmem [resolvable:$true] %s202_s7  ;;  %s205_s10 = int_to_ptr.hbm [resolvable:$true] %s204_s10 }
  0x11   :  { %232 = vmatmul.msk.f32.vlgmr.msra.gmra.mxu0 %vm63_vm1, %v62_v5  ;;  %148 = vadd.xlane.f32.xlu1 %v147_v12  ;;  %57 = vst.msk [vmem:[#allocation6] sm:$0x1] %vm54_vm3, %v356_v1 }
  0x12   :  { %v162_v43 = vsel %vm63_vm1, %v161_v42, 0.0 }
  0x14   :  { %v119_v15 = vld [vmem:[#allocation2] sm:$0x1] }
  0x15   :  { %v121_v30 = vld [vmem:[#allocation3] sm:$0x1] }
  0x16   :  { %v151_v56 = vld [vmem:[#allocation5] sm:$0x1] }
  0x19   :  { %163 = vadd.xlane.f32.xlu1 %v162_v43 }
  0x84   :  { %v149_v47 = vpop.xlane.xlu1 %148 }
  0x85   :  { %v150_v48 = vmul.f32 %v149_v47, %v61_v2  ;;  %v165_v2 = vld [vmem:[#allocation6] sm:$0x1] }
  0x87   :  { %v152_v49 = vrot.slane %v150_v48, 4 }
  0x89   :  { %v153_v51 = vadd.f32 %v152_v49, %v150_v48 }
  0x8b   :  { %v154_v53 = vrot.slane %v153_v51, 2 }
  0x8c   :  { %v164_v59 = vpop.xlane.xlu1 %163 }
  0x8d   :  { %v155_v54 = vadd.f32 %v154_v53, %v153_v51  ;;  %v166_v60 = vrot.slane %v164_v59, 4 }
  0x8e   :  { %v87_v6 = vpop.f32.mrf.mxu0 }
  0x8f   :  { %v91_v7 = vsel %vm90_vm2, %v87_v6, -inf  ;;  %v156_v55 = vrot.slane %v155_v54, 1  ;;  %v167_v61 = vadd.f32 %v166_v60, %v164_v59 }
  0x90   :  { %v113_v8 = vrot.slane %v91_v7, 4  ;;  %92 = vmax.xlane.f32.xlu0 %v91_v7 }
  0x91   :  { %v157_v57 = vadd.f32 %v156_v55, %v155_v54  ;;  %v168_v62 = vrot.slane %v167_v61, 2 }
  0x92   :  { %v114_v9 = vmax.f32 %v91_v7, %v113_v8 }
  0x93   :  { %v158_v58 = vadd.f32 %v157_v57, %v151_v56  ;;  %v169_v63 = vadd.f32 %v168_v62, %v167_v61 }
  0x94   :  { %v115_v11 = vrot.slane %v114_v9, 2 }
  0x95   :  { %159 = vst.msk [vmem:[#allocation5] sm:$0x1] %vm54_vm3, %v158_v58  ;;  %v170_v0 = vrot.slane %v169_v63, 1 }
  0x96   :  { %v116_v13 = vmax.f32 %v114_v9, %v115_v11 }
  0x97   :  { %v171_v1 = vadd.f32 %v170_v0, %v169_v63 }
  0x98   :  { %v117_v14 = vrot.slane %v116_v13, 1 }
  0x99   :  { %v172_v3 = vadd.f32 %v171_v1, %v165_v2 }
  0x9a   :  { %v118_v16 = vmax.f32 %v116_v13, %v117_v14 }
  0x9b   :  { %173 = vst.msk [vmem:[#allocation6] sm:$0x1] %vm54_vm3, %v172_v3 }
  0x9c   :  { %v120_v17 = vmax.f32 %v119_v15, %v118_v16 }
  0x9e   :  { %v127_v18 = vperm.slane %v120_v17, 0  ;;  %142 = vst.msk [vmem:[#allocation2] sm:$0x1] %vm51_vm0, %v120_v17  ;;  %v122_v21 = vsub.f32 %v119_v15, %v120_v17  ;;  %v103_v15 = vld [vmem:[#allocation4] sm:$0x1] }
  0xa0   :  { %v129_v19 = vsub.f32 %v87_v6, %v127_v18  ;;  %v123_v22 = vmul.f32 1.442695, %v122_v21  ;;  %v186_v18 = vld [vmem:[#allocation5] sm:$0x1] }
  0xa2   :  { %v130_v20 = vmul.f32 1.442695, %v129_v19  ;;  %v194_v5 = vld [vmem:[#allocation6] sm:$0x1] }
  0xa4   :  { %239 = vpow2.f32 %v130_v20 }
  0xa5   :  { %241 = vpow2.f32 %v123_v22  ;;  %v177_v38 = vld [vmem:[#allocation2] sm:$0x1] }
  0xaa   :  { %v240_v23 = vpop.eup %239 }
  0xab   :  { %v132_v24 = vsel %vm90_vm2, %v240_v23, 0.0  ;;  %v242_v29 = vpop.eup %241 }
  0xac   :  { %v133_v25 = vrot.slane %v132_v24, 4  ;;  %v125_v32 = vmul.f32 %v242_v29, %v121_v30 }
  0xae   :  { %v134_v26 = vadd.f32 %v133_v25, %v132_v24 }
  0xb0   :  { %v135_v27 = vrot.slane %v134_v26, 2 }
  0xb2   :  { %v136_v28 = vadd.f32 %v135_v27, %v134_v26 }
  0xb4   :  { %v137_v31 = vrot.slane %v136_v28, 1 }
  0xb6   :  { %v138_v33 = vadd.f32 %v137_v31, %v136_v28 }
  0xb8   :  { %v139_v34 = vadd.f32 %v138_v33, %v125_v32 }
  0xba   :  { %141 = vst.msk [vmem:[#allocation3] sm:$0x1] %vm51_vm0, %v139_v34 }
  0xc1   :  { %v178_v35 = vld [vmem:[#allocation3] sm:$0x1] }
  0xc2   :  { %243 = vlog2.f32 %v178_v35 }
  0xc8   :  { %v244_v36 = vpop.eup %243 }
  0xc9   :  { %v180_v37 = vmul.f32 0.6931472, %v244_v36 }
  0xcb   :  { %v181_v39 = vadd.f32 %v180_v37, %v177_v38 }
  0xcd   :  { %v182_v40 = vsel %vm51_vm0, %v181_v39, 0.0 }
  0xce   :  { %183 = vadd.xlane.f32.xlu2 %v182_v40 }
 0x103   :  { %v93_v44 = vpop.xlane.xlu0 %92 }
 0x104   :  { %v94_v45 = vsub.f32 %v87_v6, %v93_v44  ;;  %v195_v6 = vmul.f32 0.00390625, %v194_v5 }
 0x106   :  { %v95_v46 = vmul.f32 1.442695, %v94_v45  ;;  %196 = vst.msk [vmem:[#allocation14] sm:$0x1] %vm54_vm3, %v195_v6 }
 0x107   :  { %218 = dma.vmem_to_hbm [thread:$0]  %s214_s29, 16, %s216_s6, [#allocation15]  }
 0x108   :  { %245 = vpow2.f32 %v95_v46 }
 0x10e   :  { %v246_v50 = vpop.eup %245 }
 0x10f   :  { %v97_v52 = vsel %vm90_vm2, %v246_v50, 0.0 }
 0x110   :  { %98 = vadd.xlane.f32.xlu0 %v97_v52 }
 0x141   :  { %v184_v19 = vpop.xlane.xlu2 %183 }
 0x142   :  { %v189_v20 = vsub.f32 %v184_v19, %v186_v18 }
 0x144   :  { %v190_v23 = vmul.f32 0.125, %v189_v20 }
 0x183   :  { %v99_v4 = vpop.xlane.xlu0 %98 }
 0x184   :  { %247 = vlog2.f32 %v99_v4 }
 0x18a   :  { %v248_v7 = vpop.eup %247 }
 0x18b   :  { %v101_v8 = vmul.f32 0.6931472, %v248_v7 }
 0x18d   :  { %v102_v9 = vadd.f32 %v101_v8, %v93_v44 }
 0x18f   :  { %v104_v10 = vrot.slane %v102_v9, 4 }
 0x191   :  { %v105_v11 = vadd.f32 %v104_v10, %v102_v9 }
 0x193   :  { %v106_v12 = vrot.slane %v105_v11, 2 }
 0x195   :  { %v107_v13 = vadd.f32 %v106_v12, %v105_v11 }
 0x197   :  { %v108_v14 = vrot.slane %v107_v13, 1 }
 0x199   :  { %v109_v16 = vadd.f32 %v108_v14, %v107_v13 }
 0x19b   :  { %v110_v17 = vadd.f32 %v109_v16, %v103_v15 }
 0x19d   :  { %112 = vst.msk [vmem:[#allocation4] sm:$0x1] %vm54_vm3, %v110_v17 }
 0x1a4   :  { %v185_v21 = vld [vmem:[#allocation4] sm:$0x1] }
 0x1a5   :  { %v187_v22 = vsub.f32 %v185_v21, %v186_v18 }
 0x1a7   :  { %v188_v24 = vmul.f32 0.125, %v187_v22 }
 0x1a9   :  { %v191_v25 = vadd.f32 %v190_v23, %v188_v24 }
 0x1ab   :  { %v192_v26 = vmul.f32 0.5, %v191_v25 }
 0x1ad   :  { %193 = vst.msk [vmem:[#allocation13] sm:$0x1] %vm54_vm3, %v192_v26 }
 0x1ae   :  { %207 = dma.vmem_to_hbm [thread:$0]  %s203_s7, 16, %s205_s10, [#allocation10]  }
 0x1af   :  { %349 = dma.done.wait [#allocation10], 16  }
 0x1b0   :  { %350 = vsyncadd [#allocation10], 4294967280 }
 0x1b1   :  { %351 = dma.done.wait [#allocation15], 16  }
 0x1b2   :  { %352 = vsyncadd [#allocation15], 4294967280 }
 0x1b3   :  { %227 = vsyncpa [#allocation9], 1 }
 0x1b4   :  { %228 = vsyncpa [#allocation12], 1 }
 0x1b5   :  { %229 = vsyncpa [#allocation10], 1 }
 0x1b6   :  { %230 = vsyncpa [#allocation15], 1 }

</bundles_post_ra>
